<compile_context>
chip_gen: v5e
topology: v5e:2x2
jax: 0.10.0
libtpu: 0.0.40
codegen_flags: <defaults>
</compile_context>

<pallas_src>
import jax
import jax.numpy as jnp
from jax.experimental import pallas as pl
from jax.experimental.pallas import tpu as pltpu

# Full-f32 matmuls everywhere (in-kernel dot and the pure-JAX reference):
# exact parity with the f32 PyTorch module instead of bf16 MXU passes.
jax.config.update("jax_default_matmul_precision", "highest")

BN_EPS = 1e-5
FACTORS = (3.0, 4.0)   # block1.factor, block2.factor
NUM_LAYERS = 4         # 2 DlsBlocks x 2 (linear + bn) each


def label_adjustor_kernel(x_ref, y_ref, w_ref, gb_ref, o_ref):
    """One grid step = one independent (B, C) problem.

    x_ref, y_ref, o_ref: (B, C) f32   (leading problem dim squeezed away)
    w_ref:  (4, C, C) bf16, pre-transposed so each layer is a plain x @ W
    gb_ref: (8, C) f32 -- rows 0..3 = gamma per layer, rows 4..7 = beta
    """
    x = x_ref[...]                        # (B, C)
    y = y_ref[...]                        # (B, C) one-hot labels
    label_mask = y != 0.0                 # hoisted: reused by all 4 clamps
    inv_b = 1.0 / x.shape[0]              # static Python constant

    def linear_bn(v, idx):
        # Linear (bias cancels under batch-stat BN).  Weight upcast happens
        # once per layer, off the activation-dependency critical path.
        w = w_ref[idx].astype(jnp.float32)                       # (C, C)
        out = jnp.dot(v, w, preferred_element_type=jnp.float32)  # (B, C) f32
        # BatchNorm1d(track_running_stats=False): batch statistics, biased
        # variance, two-pass (centered) to match PyTorch numerically.
        mean = jnp.sum(out, axis=0, keepdims=True) * inv_b       # (1, C)
        centered = out - mean
        var = jnp.sum(centered * centered, axis=0, keepdims=True) * inv_b
        scale = gb_ref[idx:idx + 1, :] * jax.lax.rsqrt(var + BN_EPS)
        return centered * scale + gb_ref[NUM_LAYERS + idx:NUM_LAYERS + idx + 1, :]

    def custom_add(v, factor):
        # custom() + add: label positions -> y * factor * max|row|; everything
        # else keeps v (the y_inverse select folded into a single where).
        max_value = jnp.max(jnp.abs(v), axis=1, keepdims=True) * factor  # (B, 1)
        return jnp.where(label_mask, y * max_value, v)

    out = x
    layer = 0
    for factor in FACTORS:                       # block1 (3.0), block2 (4.0)
        out = custom_add(linear_bn(out, layer), factor)        # linear1+bn1+custom
        out = custom_add(linear_bn(out, layer + 1), factor)    # linear2+bn2+custom
        layer += 2

    # Softmax over classes (dim=1); exact divide so rows sum to 1.
    m = jnp.max(out, axis=1, keepdims=True)
    e = jnp.exp(out - m)
    o_ref[...] = e / jnp.sum(e, axis=1, keepdims=True)


def label_adjustor(x, y, w_bf16, gb):
    """x, y: (B, C) for one module forward, or (P, B, C) for P independent
    forwards amortized over one launch.  Returns softmax output, same shape."""
    squeeze = x.ndim == 2
    if squeeze:
        x, y = x[None], y[None]
    P, B, C = x.shape

    flops = P * (2 * NUM_LAYERS * B * C * C + 16 * NUM_LAYERS * B * C)
    transcendentals = P * (B * C + NUM_LAYERS * C)          # exp + rsqrt
    bytes_accessed = 3 * P * B * C * 4 + w_bf16.size * 2 + gb.size * 4

    out = pl.pallas_call(
        label_adjustor_kernel,
        out_shape=jax.ShapeDtypeStruct((P, B, C), jnp.float32),
        grid_spec=pltpu.PrefetchScalarGridSpec(
            num_scalar_prefetch=0,
            grid=(P,),
            in_specs=[
                pl.BlockSpec((None, B, C), lambda p: (p, 0, 0)),        # x
                pl.BlockSpec((None, B, C), lambda p: (p, 0, 0)),        # y
                pl.BlockSpec((NUM_LAYERS, C, C), lambda p: (0, 0, 0)),  # weights (resident)
                pl.BlockSpec((2 * NUM_LAYERS, C), lambda p: (0, 0)),    # gamma/beta (resident)
            ],
            out_specs=pl.BlockSpec((None, B, C), lambda p: (p, 0, 0)),
        ),
        compiler_params=pltpu.CompilerParams(
            dimension_semantics=("parallel",)),   # v7x: shard problems over 2 TCs
        cost_estimate=pl.CostEstimate(
            flops=flops,
            transcendentals=transcendentals,
            bytes_accessed=bytes_accessed),
    )(x, y, w_bf16, gb)
    return out[0] if squeeze else out


def init_params(key, num_classes):
    # 4 Linear layers (2 per DlsBlock): weight ~ N(0, 1), bias = 0 (matches
    # _init_weights).  Bias is not passed to the kernel: it cancels exactly
    # under the batch-statistic BatchNorm that follows every Linear.
    w = jax.random.normal(key, (NUM_LAYERS, num_classes, num_classes),
                          dtype=jnp.float32)
    # PyTorch Linear stores (out, in) and computes x @ W^T: pre-transpose so
    # the kernel does a plain x @ W.  bf16 storage halves the weight DMA as
    # num_classes grows; the in-kernel upcast to f32 is once per layer.
    w_t = jnp.transpose(w, (0, 2, 1)).astype(jnp.bfloat16)
    # BatchNorm affine params (gamma = 1, beta = 0), packed ONCE at init time
    # (these are parameters, not per-call activations): rows 0..3 gamma,
    # rows 4..7 beta.
    gamma = jnp.ones((NUM_LAYERS, num_classes), dtype=jnp.float32)
    beta = jnp.zeros((NUM_LAYERS, num_classes), dtype=jnp.float32)
    gb = jnp.concatenate([gamma, beta], axis=0)                 # (8, C)
    return w_t, gb


def label_adjustor_ref(x, y, w_bf16, gb):
    """Pure-JAX reference for one (B, C) problem, mirroring the PyTorch module."""
    w = w_bf16.astype(jnp.float32)
    gamma, beta = gb[:NUM_LAYERS], gb[NUM_LAYERS:]
    mask = y != 0.0
    out = x
    layer = 0
    for factor in FACTORS:
        for _ in range(2):
            h = jnp.dot(out, w[layer], preferred_element_type=jnp.float32)
            mean = jnp.mean(h, axis=0, keepdims=True)
            c = h - mean
            var = jnp.mean(c * c, axis=0, keepdims=True)
            h = c * (gamma[layer:layer + 1] * jax.lax.rsqrt(var + BN_EPS)) \
                + beta[layer:layer + 1]
            mx = jnp.max(jnp.abs(h), axis=1, keepdims=True) * factor
            out = jnp.where(mask, y * mx, h)
            layer += 1
    return jax.nn.softmax(out, axis=1)


if __name__ == "__main__":
    P, B, C = 4, 8, 16   # problems per launch, batch, num_classes
    key = jax.random.PRNGKey(0)
    k_w, k_x, k_lbl = jax.random.split(key, 3)

    w_bf16, gb = init_params(k_w, C)
    x = jax.random.normal(k_x, (P, B, C), dtype=jnp.float32)
    labels = jax.random.randint(k_lbl, (P, B), 0, C)
    y = jax.nn.one_hot(labels, C, dtype=jnp.float32)

    # Batched call: P independent module forwards amortized over one launch.
    out = jax.block_until_ready(label_adjustor(x, y, w_bf16, gb))
    # Single-problem call (exact nn.Module.forward signature / semantics).
    out0 = jax.block_until_ready(label_adjustor(x[0], y[0], w_bf16, gb))

    # Module's asserts: argmax(out, dim=1) == argmax(y, dim=1).
    assert bool(jnp.all(jnp.argmax(out, axis=-1) == jnp.argmax(y, axis=-1)))
    # Softmax rows sum to 1 (exact divide in the kernel).
    assert bool(jnp.allclose(jnp.sum(out, axis=-1), 1.0, atol=1e-5))
    # Batched and single-problem paths agree.
    assert bool(jnp.allclose(out0, out[0], atol=1e-6))
    # Matches the pure-JAX reference.
    ref = jnp.stack([label_adjustor_ref(x[p], y[p], w_bf16, gb)
                     for p in range(P)])
    assert bool(jnp.allclose(out, ref, atol=2e-3))

    print("KERNEL_OK")
</pallas_src>

<mosaic_0001>
module attributes {stable_mosaic.version = 11 : i64} {
  func.func @label_adjustor_kernel(%arg0: i32, %arg1: memref<1x8x16xf32, #tpu.memory_space<vmem>>, %arg2: memref<1x8x16xf32, #tpu.memory_space<vmem>>, %arg3: memref<4x16x16xbf16, #tpu.memory_space<vmem>>, %arg4: memref<8x16xf32, #tpu.memory_space<vmem>>, %arg5: memref<1x8x16xf32, #tpu.memory_space<vmem>>) attributes {dimension_semantics = [#tpu.dimension_semantics<parallel>], iteration_bounds = array<i64: 4>, scalar_prefetch = 0 : i64, scratch_operands = 0 : i64, tpu.core_type = #tpu.core_type<tc>, window_params = [{transform_indices = @transform_0, window_bounds = array<i64: 1, 8, 16>}, {transform_indices = @transform_1, window_bounds = array<i64: 1, 8, 16>}, {pipeline_mode = #tpu.pipeline_mode<synchronous>, transform_indices = @transform_2, window_bounds = array<i64: 4, 16, 16>}, {pipeline_mode = #tpu.pipeline_mode<synchronous>, transform_indices = @transform_3, window_bounds = array<i64: 8, 16>}, {transform_indices = @transform_4, window_bounds = array<i64: 1, 8, 16>}]} {
    %c0 = arith.constant 0 : index
    %c0_0 = arith.constant 0 : index
    %c0_1 = arith.constant 0 : index
    %0 = vector.load %arg1[%c0, %c0_0, %c0_1] : memref<1x8x16xf32, #tpu.memory_space<vmem>>, vector<1x8x16xf32>
    %1 = vector.shape_cast %0 : vector<1x8x16xf32> to vector<8x16xf32>
    %c0_2 = arith.constant 0 : index
    %c0_3 = arith.constant 0 : index
    %c0_4 = arith.constant 0 : index
    %2 = vector.load %arg2[%c0_2, %c0_3, %c0_4] : memref<1x8x16xf32, #tpu.memory_space<vmem>>, vector<1x8x16xf32>
    %3 = vector.shape_cast %2 : vector<1x8x16xf32> to vector<8x16xf32>
    %cst = arith.constant 0.000000e+00 : f32
    %4 = vector.broadcast %cst : f32 to vector<8x16xf32>
    %5 = arith.cmpf one, %3, %4 : vector<8x16xf32>
    %c0_5 = arith.constant 0 : index
    %c0_6 = arith.constant 0 : index
    %c0_7 = arith.constant 0 : index
    %6 = vector.load %arg3[%c0_5, %c0_6, %c0_7] : memref<4x16x16xbf16, #tpu.memory_space<vmem>>, vector<1x16x16xbf16>
    %7 = vector.shape_cast %6 : vector<1x16x16xbf16> to vector<16x16xbf16>
    %8 = arith.extf %7 : vector<16x16xbf16> to vector<16x16xf32>
    %cst_8 = arith.constant dense<0.000000e+00> : vector<8x16xf32>
    %9 = tpu.matmul %1, %8, %cst_8 {dimension_numbers = #tpu.dot_dimension_numbers<[1], [0], [0], [1], [0, 0, 1, 1], [], []>, precision = #tpu.contract_precision<fp32>} : vector<8x16xf32>, vector<16x16xf32>, vector<8x16xf32> -> vector<8x16xf32>
    %cst_9 = arith.constant dense<0.000000e+00> : vector<16xf32>
    %10 = vector.multi_reduction <add>, %9, %cst_9 [0] : vector<8x16xf32> to vector<16xf32>
    %11 = vector.shape_cast %10 : vector<16xf32> to vector<1x16xf32>
    %cst_10 = arith.constant 1.250000e-01 : f32
    %12 = vector.broadcast %cst_10 : f32 to vector<1x16xf32>
    %13 = arith.mulf %11, %12 : vector<1x16xf32>
    %14 = vector.broadcast %13 : vector<1x16xf32> to vector<8x16xf32>
    %15 = arith.subf %9, %14 : vector<8x16xf32>
    %16 = arith.mulf %15, %15 : vector<8x16xf32>
    %cst_11 = arith.constant dense<0.000000e+00> : vector<16xf32>
    %17 = vector.multi_reduction <add>, %16, %cst_11 [0] : vector<8x16xf32> to vector<16xf32>
    %18 = vector.shape_cast %17 : vector<16xf32> to vector<1x16xf32>
    %cst_12 = arith.constant 1.250000e-01 : f32
    %19 = vector.broadcast %cst_12 : f32 to vector<1x16xf32>
    %20 = arith.mulf %18, %19 : vector<1x16xf32>
    %c0_13 = arith.constant 0 : index
    %c0_14 = arith.constant 0 : index
    %21 = vector.load %arg4[%c0_13, %c0_14] : memref<8x16xf32, #tpu.memory_space<vmem>>, vector<1x16xf32>
    %cst_15 = arith.constant 9.99999974E-6 : f32
    %22 = vector.broadcast %cst_15 : f32 to vector<1x16xf32>
    %23 = arith.addf %20, %22 : vector<1x16xf32>
    %24 = math.rsqrt %23 : vector<1x16xf32>
    %25 = arith.mulf %21, %24 : vector<1x16xf32>
    %26 = vector.broadcast %25 : vector<1x16xf32> to vector<8x16xf32>
    %27 = arith.mulf %15, %26 : vector<8x16xf32>
    %c4 = arith.constant 4 : index
    %c0_16 = arith.constant 0 : index
    %28 = vector.load %arg4[%c4, %c0_16] : memref<8x16xf32, #tpu.memory_space<vmem>>, vector<1x16xf32>
    %29 = vector.broadcast %28 : vector<1x16xf32> to vector<8x16xf32>
    %30 = arith.addf %27, %29 : vector<8x16xf32>
    %31 = math.absf %30 : vector<8x16xf32>
    %cst_17 = arith.constant dense<0xFF800000> : vector<8xf32>
    %32 = vector.multi_reduction <maximumf>, %31, %cst_17 [1] : vector<8x16xf32> to vector<8xf32>
    %33 = vector.shape_cast %32 : vector<8xf32> to vector<8x1xf32>
    %cst_18 = arith.constant 3.000000e+00 : f32
    %34 = vector.broadcast %cst_18 : f32 to vector<8x1xf32>
    %35 = arith.mulf %33, %34 : vector<8x1xf32>
    %36 = vector.broadcast %35 : vector<8x1xf32> to vector<8x16xf32>
    %37 = arith.mulf %3, %36 : vector<8x16xf32>
    %38 = arith.select %5, %37, %30 : vector<8x16xi1>, vector<8x16xf32>
    %c1 = arith.constant 1 : index
    %c0_19 = arith.constant 0 : index
    %c0_20 = arith.constant 0 : index
    %39 = vector.load %arg3[%c1, %c0_19, %c0_20] : memref<4x16x16xbf16, #tpu.memory_space<vmem>>, vector<1x16x16xbf16>
    %40 = vector.shape_cast %39 : vector<1x16x16xbf16> to vector<16x16xbf16>
    %41 = arith.extf %40 : vector<16x16xbf16> to vector<16x16xf32>
    %cst_21 = arith.constant dense<0.000000e+00> : vector<8x16xf32>
    %42 = tpu.matmul %38, %41, %cst_21 {dimension_numbers = #tpu.dot_dimension_numbers<[1], [0], [0], [1], [0, 0, 1, 1], [], []>, precision = #tpu.contract_precision<fp32>} : vector<8x16xf32>, vector<16x16xf32>, vector<8x16xf32> -> vector<8x16xf32>
    %cst_22 = arith.constant dense<0.000000e+00> : vector<16xf32>
    %43 = vector.multi_reduction <add>, %42, %cst_22 [0] : vector<8x16xf32> to vector<16xf32>
    %44 = vector.shape_cast %43 : vector<16xf32> to vector<1x16xf32>
    %cst_23 = arith.constant 1.250000e-01 : f32
    %45 = vector.broadcast %cst_23 : f32 to vector<1x16xf32>
    %46 = arith.mulf %44, %45 : vector<1x16xf32>
    %47 = vector.broadcast %46 : vector<1x16xf32> to vector<8x16xf32>
    %48 = arith.subf %42, %47 : vector<8x16xf32>
    %49 = arith.mulf %48, %48 : vector<8x16xf32>
    %cst_24 = arith.constant dense<0.000000e+00> : vector<16xf32>
    %50 = vector.multi_reduction <add>, %49, %cst_24 [0] : vector<8x16xf32> to vector<16xf32>
    %51 = vector.shape_cast %50 : vector<16xf32> to vector<1x16xf32>
    %cst_25 = arith.constant 1.250000e-01 : f32
    %52 = vector.broadcast %cst_25 : f32 to vector<1x16xf32>
    %53 = arith.mulf %51, %52 : vector<1x16xf32>
    %c1_26 = arith.constant 1 : index
    %c0_27 = arith.constant 0 : index
    %54 = vector.load %arg4[%c1_26, %c0_27] : memref<8x16xf32, #tpu.memory_space<vmem>>, vector<1x16xf32>
    %cst_28 = arith.constant 9.99999974E-6 : f32
    %55 = vector.broadcast %cst_28 : f32 to vector<1x16xf32>
    %56 = arith.addf %53, %55 : vector<1x16xf32>
    %57 = math.rsqrt %56 : vector<1x16xf32>
    %58 = arith.mulf %54, %57 : vector<1x16xf32>
    %59 = vector.broadcast %58 : vector<1x16xf32> to vector<8x16xf32>
    %60 = arith.mulf %48, %59 : vector<8x16xf32>
    %c5 = arith.constant 5 : index
    %c0_29 = arith.constant 0 : index
    %61 = vector.load %arg4[%c5, %c0_29] : memref<8x16xf32, #tpu.memory_space<vmem>>, vector<1x16xf32>
    %62 = vector.broadcast %61 : vector<1x16xf32> to vector<8x16xf32>
    %63 = arith.addf %60, %62 : vector<8x16xf32>
    %64 = math.absf %63 : vector<8x16xf32>
    %cst_30 = arith.constant dense<0xFF800000> : vector<8xf32>
    %65 = vector.multi_reduction <maximumf>, %64, %cst_30 [1] : vector<8x16xf32> to vector<8xf32>
    %66 = vector.shape_cast %65 : vector<8xf32> to vector<8x1xf32>
    %cst_31 = arith.constant 3.000000e+00 : f32
    %67 = vector.broadcast %cst_31 : f32 to vector<8x1xf32>
    %68 = arith.mulf %66, %67 : vector<8x1xf32>
    %69 = vector.broadcast %68 : vector<8x1xf32> to vector<8x16xf32>
    %70 = arith.mulf %3, %69 : vector<8x16xf32>
    %71 = arith.select %5, %70, %63 : vector<8x16xi1>, vector<8x16xf32>
    %c2 = arith.constant 2 : index
    %c0_32 = arith.constant 0 : index
    %c0_33 = arith.constant 0 : index
    %72 = vector.load %arg3[%c2, %c0_32, %c0_33] : memref<4x16x16xbf16, #tpu.memory_space<vmem>>, vector<1x16x16xbf16>
    %73 = vector.shape_cast %72 : vector<1x16x16xbf16> to vector<16x16xbf16>
    %74 = arith.extf %73 : vector<16x16xbf16> to vector<16x16xf32>
    %cst_34 = arith.constant dense<0.000000e+00> : vector<8x16xf32>
    %75 = tpu.matmul %71, %74, %cst_34 {dimension_numbers = #tpu.dot_dimension_numbers<[1], [0], [0], [1], [0, 0, 1, 1], [], []>, precision = #tpu.contract_precision<fp32>} : vector<8x16xf32>, vector<16x16xf32>, vector<8x16xf32> -> vector<8x16xf32>
    %cst_35 = arith.constant dense<0.000000e+00> : vector<16xf32>
    %76 = vector.multi_reduction <add>, %75, %cst_35 [0] : vector<8x16xf32> to vector<16xf32>
    %77 = vector.shape_cast %76 : vector<16xf32> to vector<1x16xf32>
    %cst_36 = arith.constant 1.250000e-01 : f32
    %78 = vector.broadcast %cst_36 : f32 to vector<1x16xf32>
    %79 = arith.mulf %77, %78 : vector<1x16xf32>
    %80 = vector.broadcast %79 : vector<1x16xf32> to vector<8x16xf32>
    %81 = arith.subf %75, %80 : vector<8x16xf32>
    %82 = arith.mulf %81, %81 : vector<8x16xf32>
    %cst_37 = arith.constant dense<0.000000e+00> : vector<16xf32>
    %83 = vector.multi_reduction <add>, %82, %cst_37 [0] : vector<8x16xf32> to vector<16xf32>
    %84 = vector.shape_cast %83 : vector<16xf32> to vector<1x16xf32>
    %cst_38 = arith.constant 1.250000e-01 : f32
    %85 = vector.broadcast %cst_38 : f32 to vector<1x16xf32>
    %86 = arith.mulf %84, %85 : vector<1x16xf32>
    %c2_39 = arith.constant 2 : index
    %c0_40 = arith.constant 0 : index
    %87 = vector.load %arg4[%c2_39, %c0_40] : memref<8x16xf32, #tpu.memory_space<vmem>>, vector<1x16xf32>
    %cst_41 = arith.constant 9.99999974E-6 : f32
    %88 = vector.broadcast %cst_41 : f32 to vector<1x16xf32>
    %89 = arith.addf %86, %88 : vector<1x16xf32>
    %90 = math.rsqrt %89 : vector<1x16xf32>
    %91 = arith.mulf %87, %90 : vector<1x16xf32>
    %92 = vector.broadcast %91 : vector<1x16xf32> to vector<8x16xf32>
    %93 = arith.mulf %81, %92 : vector<8x16xf32>
    %c6 = arith.constant 6 : index
    %c0_42 = arith.constant 0 : index
    %94 = vector.load %arg4[%c6, %c0_42] : memref<8x16xf32, #tpu.memory_space<vmem>>, vector<1x16xf32>
    %95 = vector.broadcast %94 : vector<1x16xf32> to vector<8x16xf32>
    %96 = arith.addf %93, %95 : vector<8x16xf32>
    %97 = math.absf %96 : vector<8x16xf32>
    %cst_43 = arith.constant dense<0xFF800000> : vector<8xf32>
    %98 = vector.multi_reduction <maximumf>, %97, %cst_43 [1] : vector<8x16xf32> to vector<8xf32>
    %99 = vector.shape_cast %98 : vector<8xf32> to vector<8x1xf32>
    %cst_44 = arith.constant 4.000000e+00 : f32
    %100 = vector.broadcast %cst_44 : f32 to vector<8x1xf32>
    %101 = arith.mulf %99, %100 : vector<8x1xf32>
    %102 = vector.broadcast %101 : vector<8x1xf32> to vector<8x16xf32>
    %103 = arith.mulf %3, %102 : vector<8x16xf32>
    %104 = arith.select %5, %103, %96 : vector<8x16xi1>, vector<8x16xf32>
    %c3 = arith.constant 3 : index
    %c0_45 = arith.constant 0 : index
    %c0_46 = arith.constant 0 : index
    %105 = vector.load %arg3[%c3, %c0_45, %c0_46] : memref<4x16x16xbf16, #tpu.memory_space<vmem>>, vector<1x16x16xbf16>
    %106 = vector.shape_cast %105 : vector<1x16x16xbf16> to vector<16x16xbf16>
    %107 = arith.extf %106 : vector<16x16xbf16> to vector<16x16xf32>
    %cst_47 = arith.constant dense<0.000000e+00> : vector<8x16xf32>
    %108 = tpu.matmul %104, %107, %cst_47 {dimension_numbers = #tpu.dot_dimension_numbers<[1], [0], [0], [1], [0, 0, 1, 1], [], []>, precision = #tpu.contract_precision<fp32>} : vector<8x16xf32>, vector<16x16xf32>, vector<8x16xf32> -> vector<8x16xf32>
    %cst_48 = arith.constant dense<0.000000e+00> : vector<16xf32>
    %109 = vector.multi_reduction <add>, %108, %cst_48 [0] : vector<8x16xf32> to vector<16xf32>
    %110 = vector.shape_cast %109 : vector<16xf32> to vector<1x16xf32>
    %cst_49 = arith.constant 1.250000e-01 : f32
    %111 = vector.broadcast %cst_49 : f32 to vector<1x16xf32>
    %112 = arith.mulf %110, %111 : vector<1x16xf32>
    %113 = vector.broadcast %112 : vector<1x16xf32> to vector<8x16xf32>
    %114 = arith.subf %108, %113 : vector<8x16xf32>
    %115 = arith.mulf %114, %114 : vector<8x16xf32>
    %cst_50 = arith.constant dense<0.000000e+00> : vector<16xf32>
    %116 = vector.multi_reduction <add>, %115, %cst_50 [0] : vector<8x16xf32> to vector<16xf32>
    %117 = vector.shape_cast %116 : vector<16xf32> to vector<1x16xf32>
    %cst_51 = arith.constant 1.250000e-01 : f32
    %118 = vector.broadcast %cst_51 : f32 to vector<1x16xf32>
    %119 = arith.mulf %117, %118 : vector<1x16xf32>
    %c3_52 = arith.constant 3 : index
    %c0_53 = arith.constant 0 : index
    %120 = vector.load %arg4[%c3_52, %c0_53] : memref<8x16xf32, #tpu.memory_space<vmem>>, vector<1x16xf32>
    %cst_54 = arith.constant 9.99999974E-6 : f32
    %121 = vector.broadcast %cst_54 : f32 to vector<1x16xf32>
    %122 = arith.addf %119, %121 : vector<1x16xf32>
    %123 = math.rsqrt %122 : vector<1x16xf32>
    %124 = arith.mulf %120, %123 : vector<1x16xf32>
    %125 = vector.broadcast %124 : vector<1x16xf32> to vector<8x16xf32>
    %126 = arith.mulf %114, %125 : vector<8x16xf32>
    %c7 = arith.constant 7 : index
    %c0_55 = arith.constant 0 : index
    %127 = vector.load %arg4[%c7, %c0_55] : memref<8x16xf32, #tpu.memory_space<vmem>>, vector<1x16xf32>
    %128 = vector.broadcast %127 : vector<1x16xf32> to vector<8x16xf32>
    %129 = arith.addf %126, %128 : vector<8x16xf32>
    %130 = math.absf %129 : vector<8x16xf32>
    %cst_56 = arith.constant dense<0xFF800000> : vector<8xf32>
    %131 = vector.multi_reduction <maximumf>, %130, %cst_56 [1] : vector<8x16xf32> to vector<8xf32>
    %132 = vector.shape_cast %131 : vector<8xf32> to vector<8x1xf32>
    %cst_57 = arith.constant 4.000000e+00 : f32
    %133 = vector.broadcast %cst_57 : f32 to vector<8x1xf32>
    %134 = arith.mulf %132, %133 : vector<8x1xf32>
    %135 = vector.broadcast %134 : vector<8x1xf32> to vector<8x16xf32>
    %136 = arith.mulf %3, %135 : vector<8x16xf32>
    %137 = arith.select %5, %136, %129 : vector<8x16xi1>, vector<8x16xf32>
    %cst_58 = arith.constant dense<0xFF800000> : vector<8xf32>
    %138 = vector.multi_reduction <maximumf>, %137, %cst_58 [1] : vector<8x16xf32> to vector<8xf32>
    %139 = vector.shape_cast %138 : vector<8xf32> to vector<8x1xf32>
    %140 = vector.broadcast %139 : vector<8x1xf32> to vector<8x16xf32>
    %141 = arith.subf %137, %140 : vector<8x16xf32>
    %142 = math.exp %141 : vector<8x16xf32>
    %cst_59 = arith.constant dense<0.000000e+00> : vector<8xf32>
    %143 = vector.multi_reduction <add>, %142, %cst_59 [1] : vector<8x16xf32> to vector<8xf32>
    %144 = vector.shape_cast %143 : vector<8xf32> to vector<8x1xf32>
    %145 = vector.broadcast %144 : vector<8x1xf32> to vector<8x16xf32>
    %146 = arith.divf %142, %145 : vector<8x16xf32>
    %c0_60 = arith.constant 0 : index
    %c0_61 = arith.constant 0 : index
    %c0_62 = arith.constant 0 : index
    %147 = vector.load %arg5[%c0_60, %c0_61, %c0_62] : memref<1x8x16xf32, #tpu.memory_space<vmem>>, vector<1x8x16xf32>
    %148 = vector.shape_cast %147 : vector<1x8x16xf32> to vector<8x16xf32>
    %149 = vector.shape_cast %146 : vector<8x16xf32> to vector<1x8x16xf32>
    tpu.vector_store %arg5[%c0_60, %c0_61, %c0_62], %149 {strides = array<i32>} : memref<1x8x16xf32, #tpu.memory_space<vmem>>, vector<1x8x16xf32>,
    return
  }
  func.func @transform_0(%arg0: i32) -> (i32, i32, i32) {
    %c0_i32 = arith.constant 0 : i32
    %c0_i32_0 = arith.constant 0 : i32
    %c0_i32_1 = arith.constant 0 : i32
    return %arg0, %c0_i32, %c0_i32_0 : i32, i32, i32
  }
  func.func @transform_1(%arg0: i32) -> (i32, i32, i32) {
    %c0_i32 = arith.constant 0 : i32
    %c0_i32_0 = arith.constant 0 : i32
    %c0_i32_1 = arith.constant 0 : i32
    return %arg0, %c0_i32, %c0_i32_0 : i32, i32, i32
  }
  func.func @transform_2(%arg0: i32) -> (i32, i32, i32) {
    %c0_i32 = arith.constant 0 : i32
    %c0_i32_0 = arith.constant 0 : i32
    %c0_i32_1 = arith.constant 0 : i32
    %c0_i32_2 = arith.constant 0 : i32
    return %c0_i32, %c0_i32_0, %c0_i32_1 : i32, i32, i32
  }
  func.func @transform_3(%arg0: i32) -> (i32, i32) {
    %c0_i32 = arith.constant 0 : i32
    %c0_i32_0 = arith.constant 0 : i32
    %c0_i32_1 = arith.constant 0 : i32
    return %c0_i32, %c0_i32_0 : i32, i32
  }
  func.func @transform_4(%arg0: i32) -> (i32, i32, i32) {
    %c0_i32 = arith.constant 0 : i32
    %c0_i32_0 = arith.constant 0 : i32
    %c0_i32_1 = arith.constant 0 : i32
    return %arg0, %c0_i32, %c0_i32_0 : i32, i32, i32
  }
}

</mosaic_0001>

<bundles_post_ra>
// kernel: tpu_custom_call.1
= control target key start
LH: loop header
LB: loop body
LE: loop exit
PB: predicated region body
PF: predicated region fallthrough
CT: control target
= control target key end

     0   :  { %s1802_s0 = inlined_call_operand.hbm [shape: f32[4,8,16], index: 0, kind: input, shape index: {}]   ;;  %s1803_s1 = inlined_call_operand.hbm [shape: f32[4,8,16], index: 1, kind: input, shape index: {}]   ;;  %s1804_s2 = inlined_call_operand.hbm [shape: bf16[4,16,16], index: 2, kind: input, shape index: {}]   ;;  %s1805_s3 = inlined_call_operand.hbm [shape: f32[8,16], index: 3, kind: input, shape index: {}]   ;;  %s1806_s4 = inlined_call_operand.hbm [shape: f32[4,8,16], index: 4, kind: output, shape index: {}]  }
   0x1   :  { %1807 = sst [smem:[#allocation17_spill]] %s1804_s2 }
   0x2   :  { %1808 = sst [smem:[#allocation18_spill]] %s1805_s3 }
   0x3   :  { %9 = vsyncpa [#allocation3], 0 }
   0x4   :  { %11 = vsyncpa [#allocation3 + $0x1], 0 }
   0x5   :  { %12 = vsyncpa [#allocation6], 0 }
   0x6   :  { %14 = vsyncpa [#allocation6 + $0x1], 0 }
   0x7   :  { %15 = vsyncpa [#allocation9], 0 }
   0x8   :  { %16 = vsyncpa [#allocation4], 0 }
   0x9   :  { %18 = vsyncpa [#allocation4 + $0x1], 0  ;;  %s1587_s15 = smov 0   ;;  %s1589_s16 = smov 0  }
   0xa   :  { %s1591_s17 = smov 0   ;;  %s1593_s18 = smov 0  }
   0xb LB: > { %s1809_s2 = sld [smem:[#allocation17_spill]]  ;;  %s1611_s22 = sadd.s32 4294967295, %s1556_s18   ;;  %s1556_s18 = sphi %s1593_s18, %s1822_s18   ;;  %s1552_s17 = sphi %s1591_s17, %s1821_s17   ;;  %s1548_s16 = sphi %s1589_s16, %s1820_s16   ;;  %s1544_s15 = sphi %s1587_s15, %s1819_s15  }
   0xc   : > { %p1234_p0 = scmp.ge.s32.totalorder %s1556_s18, 1  ;;  %p45_p1 = scmp.eq.s32.totalorder %s1611_s22, 0 }
   0xd   : > { %p149_p2 = scmp.lt.s32.totalorder %s1556_s18, 5  ;;  %s1558_s24 = smov [#allocation7]  }
   0xe   : > { %s162_s25 = sshll.u32 %s1558_s24, 4  ;;  %s1811_s3 = sld [smem:[#allocation18_spill]]  ;;  %s163_s25 = int_to_ptr.vmem [resolvable:$true] %s162_s25 }
   0xf   : > { %p1616_p3 = pnand %p1234_p0, %p149_p2  ;;  %s1559_s29 = smov [#allocation8]  }
  0x10   : > { %s177_s30 = sshll.u32 %s1559_s29, 4  ;;  %s1560_s5 = smov 64   ;;  %s178_s30 = int_to_ptr.vmem [resolvable:$true] %s177_s30 }
  0x11   : > { %s160_s21 = sshll.u32 %s1809_s2, 4  ;;  %p1282_p4 = pneg %p1616_p3  ;;  %s161_s21 = int_to_ptr.hbm [resolvable:$true] %s160_s21 }
  0x12   : > { %s1561_s6 = smov 4   ;;  %s1233_s7 = sadd.s32 4294967294, %s1556_s18  }
  0x13   : > { %p1283_p5 = pnand %p1282_p4, %p45_p1  ;;  %s1629_s8 = sadd.s32 1, %s1556_s18  }
  0x14   : > { %s175_s28 = sshll.u32 %s1811_s3, 4  ;;  %s28_s9 = ssub.s32 %s1556_s18, %s1629_s8  ;;  %s176_s28 = int_to_ptr.hbm [resolvable:$true] %s175_s28 }
  0x15   : > { %1285 = dma.hbm_to_vmem [thread:$0]  (!%p1283_p5), %s161_s21, 512, %s163_s25, [#allocation6], %s1560_s5, %s1560_s5, %s1561_s6  }
  0x16   : > { %1288 = dma.hbm_to_vmem [thread:$0]  (!%p1283_p5), %s176_s28, 128, %s178_s30, [#allocation9]  }
  0x17   : > { %s31_s10 = sadd.s32 1, %s1552_s17  ;;  %p29_p6 = scmp.eq.s32.totalorder %s28_s9, 0 }
  0x18   : > { %p38_p7 = scmp.ne.s32.totalorder %s1552_s17, %s1548_s16  ;;  %p39_p8 = scmp.eq.s32.totalorder %s1556_s18, 0 }
  0x19   : > { %p44_p9 = scmp.ne.s32.totalorder %s1548_s16, %s1544_s15  ;;  %p136_p12 = scmp.eq.s32.totalorder %s1611_s22, 3 }
  0x1a   : > { %s1640_s11 = scalar_select %p29_p6, %s1552_s17, %s31_s10  }
  0x1b   : > { %p1642_p10 = por %p39_p8, %p38_p7  ;;  %p1648_p11 = por %p45_p1, %p44_p9 }
  0x1c   : > { %1812 = sst [smem:[#allocation16_spill]] %s1640_s11  ;;  %p142_p13 = scmp.eq.s32.totalorder %s1233_s7, 3 }
  0x1d   : > { %p1302_p0 = scmp.lt.s32.totalorder %s1556_s18, 4  ;;  %s188_s14 = sand.u32 1, %s1552_s17  }
  0x1e   : > { %p1655_p2 = por %p136_p12, %p38_p7  ;;  %p1659_p4 = por %p142_p13, %p44_p9 }
  0x1f   : > { %s1663_s21 = sshll.u32 %s188_s14, 3  ;;  %s1239_s24 = sshll.u32 %s1556_s18, 3 }
  0x20   : > { %s196_s27 = scalar_lea.hbm %s1802_s0, %s1239_s24  ;;  %s192_s28 = scalar_lea.vmem [#allocation2], %s1663_s21 }
  0x21   : > { %s200_s29 = sshll.u32 %s192_s28, 4  ;;  %s198_s30 = sshll.u32 %s196_s27, 4  ;;  %s201_s29 = int_to_ptr.vmem [resolvable:$true] %s200_s29  ;;  %s199_s30 = int_to_ptr.hbm [resolvable:$true] %s198_s30 }
  0x22   : > { %p1672_p5 = pnand %p1302_p0, %p1642_p10  ;;  %s215_s9 = scalar_lea.hbm %s1803_s1, %s1239_s24 }
  0x23   : > { %s207_s10 = sand.u32 1, %s1556_s18   ;;  %s189_s2 = scalar_lea.sflag [#allocation3], %s188_s14 }
  0x24   : > { %s1418_s25 = sshra.s32 %s199_s30, 4  ;;  %p1422_p7 = pneg %p1672_p5  ;;  %s1419_s25 = int_to_ptr.hbm [resolvable:$true] %s1418_s25 }
  0x25   : > { %s1420_s26 = scalar_lea.hbm %s1419_s25, 8  ;;  %s1425_s28 = scalar_lea.hbm %s1802_s0, 32 }
  0x26   : > { %p1421_p6 = scmp.ne.s32.totalorder %s1419_s25, %s1420_s26  ;;  %p1426_p10 = scmp.lt.s32.totalorder %s1419_s25, %s1802_s0 }
  0x27   : > { %p1427_p12 = scmp.lt.s32.totalorder %s1425_s28, %s1420_s26 }
  0x28   : > { %p1423_p8 = pnand %p1422_p7, %p1421_p6 }
  0x29   : > { %p1428_p13 = por %p1427_p12, %p1426_p10 }
  0x2a   : > { %p1424_p9 = pneg %p1423_p8 }
  0x2c   : > { %p1429_p0 = pnand %p1428_p13, %p1424_p9 }
  0x2e   : > { %1432 = shalt.err (!%p1429_p0)
}
  0x2f   : > { %1292 = dma.hbm_to_vmem [thread:$0]  (!%p1672_p5), %s199_s30, 128, %s201_s29, %s189_s2  }
  0x30   : > { %s217_s14 = sshll.u32 %s215_s9, 4  ;;  %s211_s24 = scalar_lea.vmem [#allocation5], %s1663_s21  ;;  %s218_s14 = int_to_ptr.hbm [resolvable:$true] %s217_s14 }
  0x31   : > { %s219_s3 = sshll.u32 %s211_s24, 4  ;;  %s208_s12 = scalar_lea.sflag [#allocation6], %s207_s10  ;;  %s220_s3 = int_to_ptr.vmem [resolvable:$true] %s219_s3 }
  0x32   : > { %s1448_s27 = sshra.s32 %s218_s14, 4  ;;  %s1455_s28 = scalar_lea.hbm %s1803_s1, 32  ;;  %s1449_s27 = int_to_ptr.hbm [resolvable:$true] %s1448_s27 }
  0x33   : > { %s1450_s11 = scalar_lea.hbm %s1449_s27, 8  ;;  %p1456_p10 = scmp.lt.s32.totalorder %s1449_s27, %s1803_s1 }
  0x34   : > { %p1451_p6 = scmp.ne.s32.totalorder %s1449_s27, %s1450_s11  ;;  %p1457_p12 = scmp.lt.s32.totalorder %s1455_s28, %s1450_s11 }
  0x36   : > { %p1453_p8 = pnand %p1451_p6, %p1422_p7  ;;  %p1458_p13 = por %p1457_p12, %p1456_p10 }
  0x38   : > { %p1454_p9 = pneg %p1453_p8 }
  0x3a   : > { %p1459_p0 = pnand %p1458_p13, %p1454_p9 }
  0x3c   : > { %1462 = shalt.err (!%p1459_p0)
}
  0x3d   : > { %1295 = dma.hbm_to_vmem [thread:$0]  (!%p1672_p5), %s218_s14, 128, %s220_s3, %s208_s12  }
  0x3e   : > { %228 = sbr.rel (%p1616_p3) target bundleno = 1696 (0x6a0), region = 36  ;;  %s1708_s21 = sand.u32 (!%p1616_p3), 1, %s1548_s16  }
  0x3f   : > { %s1711_s29 = sshll.u32 (!%p1616_p3), %s1708_s21, 3  ;;  %s231_s30 = scalar_lea.sflag (!%p1616_p3), [#allocation3], %s1708_s21 }
  0x40   : > { %s234_s11 = scalar_lea.vmem (!%p1616_p3), [#allocation2], %s1711_s29 }
  0x43   : > { %1523 = dma.done.wait (%p1648_p11), %s231_s30, 128  }
  0x44   : > { %1525 = vsyncadd (%p1648_p11), %s231_s30, 4294967168  ;;  %s240_s3 = sand.u32 1, %s1611_s22   ;;  %s244_s5 = scalar_lea.vmem [#allocation5], %s1711_s29 }
  0x45   : > { %s241_s23 = scalar_lea.sflag [#allocation6], %s240_s3 }
  0x46   : > { %1527 = dma.done.wait (%p1648_p11), %s241_s23, 128  }
  0x47   : > { %1529 = vsyncadd (%p1648_p11), %s241_s23, 4294967168 }
  0x48   : > { %1531 = dma.done.wait (%p45_p1), [#allocation6], 512  }
  0x49   : > { %1533 = vsyncadd (%p45_p1), [#allocation6], 4294966784 }
  0x4a   : > { %1535 = dma.done.wait (%p45_p1), [#allocation9], 128  }
  0x4b   : > { %1537 = vsyncadd (%p45_p1), [#allocation9], 4294967168  ;;  %vm292_vm0 = vcmask 130048   ;;  %v1253_v0 = vld [vmem:[#allocation7] sm:$0xff]   ;;  %v1257_v63 = vld [vmem:[#allocation7 + $0x8] sm:$0xff]   ;;  %s1249_s13 = sshll.u32 %s1611_s22, 3 }
  0x4c   : > { %v285_v1 = vld [vmem:[%s234_s11] sm:$0xff]  ;;  %v1255_v2 = vunpack.c.h.bf16 %v1253_v0  ;;  %v1254_v3 = vunpack.c.l.bf16 %v1253_v0  ;;  %v1259_v0 = vunpack.c.h.bf16 %v1257_v63  ;;  %s1116_s7 = scalar_lea.hbm %s1806_s4, %s1249_s13  ;;  %s284_s14 = scalar_lea.vmem [#allocation10], %s1711_s29 }
  0x4d   : > { %v294_v4 = vsel %vm292_vm0, %v285_v1, 0  ;;  %v461_v53 = vld [vmem:[#allocation8] sm:$0x1]  ;;  %v1342_v58 = vld [vmem:[#allocation8 + $0x4] ss:$0 sm:$0xff]  ;;  %s1118_s24 = sshll.u32 %s284_s14, 4  ;;  %s1119_s24 = int_to_ptr.vmem [resolvable:$true] %s1118_s24 }
  0x4e   : > { %v312_v5 = vand.u32 4294901760, %v294_v4  ;;  %v335_v6 = vsub.f32 %v1255_v2, %v1255_v2  ;;  %310 = vmatpush.msra.mxu0 %v1255_v2  ;;  %v340_v7 = vsub.f32 %v1254_v3, %v1254_v3  ;;  %388 = vmatpush.msra.mxu3 %v1255_v2  ;;  %v533_v1 = vsub.f32 %v1259_v0, %v1259_v0  ;;  %s1120_s12 = sshll.u32 %s1116_s7, 4  ;;  %s1106_s22 = scalar_lea.sflag [#allocation4], %s1708_s21  ;;  %s1121_s12 = int_to_ptr.hbm [resolvable:$true] %s1120_s12 }
  0x4f   : > { %s1492_s27 = sshra.s32 %s1121_s12, 4  ;;  %s1498_s6 = scalar_lea.hbm %s1806_s4, 32  ;;  %s1493_s27 = int_to_ptr.hbm [resolvable:$true] %s1492_s27 }
  0x50   : > { %v313_v8 = vsub.f32 %v294_v4, %v312_v5  ;;  %365 = vmatpush.msra.mxu2 %v335_v6  ;;  %311 = vmatpush.msra.mxu0 %v1254_v3  ;;  %v336_v9 = vand.u32 4294901760, %v335_v6  ;;  %v341_v10 = vand.u32 4294901760, %v340_v7  ;;  %s1494_s25 = scalar_lea.hbm %s1493_s27, 8  ;;  %p1499_p5 = scmp.lt.s32.totalorder %s1493_s27, %s1806_s4 }
  0x51   : > { %389 = vmatpush.msra.mxu3 %v1254_v3  ;;  %p1495_p1 = scmp.ne.s32.totalorder %s1493_s27, %s1494_s25  ;;  %p1500_p7 = scmp.lt.s32.totalorder %s1498_s6, %s1494_s25 }
  0x52   : > { %v314_v11 = vand.u32 4294901760, %v313_v8  ;;  %367 = vmatpush.msra.mxu2 %v340_v7  ;;  %v337_v12 = vsub.f32 %v335_v6, %v336_v9  ;;  %413 = vmatpush.msrb.mxu0 %v336_v9  ;;  %v342_v13 = vsub.f32 %v340_v7, %v341_v10 }
  0x53   : > { %370 = vmatmul.f32.vlgmr.msra.gmra.mxu2 %v313_v8  ;;  %p1496_p3 = pnand %p1495_p1, %p1655_p2  ;;  %p1501_p6 = por %p1500_p7, %p1499_p5 }
  0x54   : > { %v315_v14 = vsub.f32 %v313_v8, %v314_v11  ;;  %393 = vmatmul.f32.vlgmr.msra.gmra.mxu3 %v314_v11  ;;  %v338_v15 = vand.u32 4294901760, %v337_v12  ;;  %v343_v16 = vand.u32 4294901760, %v342_v13  ;;  %416 = vmatpush.msrb.mxu0 %v341_v10  ;;  %v1739_v10 = vld [vmem:[%s244_s5] sm:$0xff] }
  0x55   : > { %508 = vmatpush.msrb.mxu2 %v1259_v0  ;;  %vm287_vm4 = vcmp.ne.f32.partialorder %v1739_v10, 0.0  ;;  %p1497_p11 = pneg %p1496_p3 }
  0x56   : > { %v316_v17 = vand.u32 4294901760, %v315_v14  ;;  %339 = vmatpush.msra.mxu1 %v338_v15 }
  0x57   : > { %p1502_p8 = pnand %p1501_p6, %p1497_p11 }
  0x58   : > { %317 = vmatmul.f32.vlgmr.msra.gmra.mxu0 %v316_v17  ;;  %344 = vmatpush.msra.mxu1 %v343_v16 }
  0x59   : > { %346 = vmatmul.f32.vlgmr.msra.gmra.mxu1 %v312_v5  ;;  %563 = vmatpush.msra.mxu0 %v533_v1 }
  0x5a   : > { %436 = vmatpush.msrb.mxu1 %v1255_v2  ;;  %v1258_v2 = vunpack.c.l.bf16 %v1257_v63 }
  0x5c   : > { %437 = vmatpush.msrb.mxu1 %v1254_v3  ;;  %v534_v3 = vand.u32 4294901760, %v533_v1  ;;  %v538_v4 = vsub.f32 %v1258_v2, %v1258_v2  ;;  %509 = vmatpush.msrb.mxu2 %v1258_v2 }
  0x5e   : > { %586 = vmatpush.msra.mxu1 %v1259_v0  ;;  %v539_v6 = vand.u32 4294901760, %v538_v4  ;;  %565 = vmatpush.msra.mxu0 %v538_v4 }
  0x5f   : > { %611 = vmatpush.msra.mxu2 %v534_v3 }
  0x60   : > { %418 = vmatmul.f32.vlgmr.msrb.gmra.mxu0 %v312_v5  ;;  %587 = vmatpush.msra.mxu1 %v1258_v2  ;;  %v540_v8 = vsub.f32 %v538_v4, %v539_v6 }
  0x61   : > { %439 = vmatmul.f32.vlgmr.msrb.gmra.mxu1 %v312_v5  ;;  %v535_v5 = vsub.f32 %v533_v1, %v534_v3  ;;  %614 = vmatpush.msra.mxu2 %v539_v6 }
  0x62   : > { %v541_v9 = vand.u32 4294901760, %v540_v8 }
  0x63   : > { %v536_v7 = vand.u32 4294901760, %v535_v5 }
  0x65   : > { %537 = vmatpush.msrb.mxu3 %v536_v7 }
  0x67   : > { %542 = vmatpush.msrb.mxu3 %v541_v9 }
  0x69   : > { %634 = vmatpush.msra.mxu3 %v1259_v0 }
  0x6b   : > { %635 = vmatpush.msra.mxu3 %v1258_v2  ;;  %v1261_v2 = vld [vmem:[#allocation7 + $0x10] sm:$0xff]  }
  0x6c   : > { %v1263_v3 = vunpack.c.h.bf16 %v1261_v2  ;;  %v1262_v5 = vunpack.c.l.bf16 %v1261_v2 }
  0x6e   : > { %v731_v4 = vsub.f32 %v1263_v3, %v1263_v3  ;;  %706 = vmatpush.msrb.mxu0 %v1263_v3  ;;  %v736_v7 = vsub.f32 %v1262_v5, %v1262_v5 }
  0x70   : > { %v732_v6 = vand.u32 4294901760, %v731_v4  ;;  %707 = vmatpush.msrb.mxu0 %v1262_v5  ;;  %v737_v9 = vand.u32 4294901760, %v736_v7 }
  0x72   : > { %v733_v8 = vsub.f32 %v731_v4, %v732_v6 }
  0xd5   : > { %v318_v18 = vpop.f32.mrf.mxu0 }
  0xd6   : > { %v347_v19 = vpop.f32.mrf.mxu1  ;;  %v371_v20 = vpop.f32.mrf.mxu2 }
  0xd7   : > { %v348_v21 = vadd.f32 %v347_v19, %v318_v18  ;;  %v394_v22 = vpop.f32.mrf.mxu3 }
  0xd9   : > { %v372_v23 = vadd.f32 %v371_v20, %v348_v21 }
  0xdb   : > { %v395_v24 = vadd.f32 %v394_v22, %v372_v23 }
  0xdd   : > { %v419_v25 = vpop.f32.mrf.mxu0 }
  0xde   : > { %v420_v26 = vadd.f32 %v419_v25, %v395_v24  ;;  %v440_v27 = vpop.f32.mrf.mxu1 }
  0xe0   : > { %v441_v28 = vadd.f32 %v440_v27, %v420_v26 }
  0xe2   : > { %v443_v29 = vsel %vm292_vm0, %v441_v28, 0.0 }
  0xe3   : > { %v444_v30 = vrot.slane %v443_v29, 4 }
  0xe5   : > { %v445_v31 = vadd.f32 %v444_v30, %v443_v29 }
  0xe7   : > { %v446_v32 = vrot.slane %v445_v31, 2 }
  0xe9   : > { %v447_v33 = vadd.f32 %v446_v32, %v445_v31 }
  0xeb   : > { %v448_v34 = vrot.slane %v447_v33, 1 }
  0xed   : > { %v449_v35 = vadd.f32 %v448_v34, %v447_v33 }
  0xef   : > { %v450_v36 = vmul.f32 0.125, %v449_v35 }
  0xf1   : > { %v451_v37 = vsub.f32 %v441_v28, %v450_v36 }
  0xf3   : > { %v452_v38 = vmul.f32 %v451_v37, %v451_v37 }
  0xf5   : > { %v453_v39 = vsel %vm292_vm0, %v452_v38, 0.0 }
  0xf6   : > { %v454_v40 = vrot.slane %v453_v39, 4 }
  0xf8   : > { %v455_v41 = vadd.f32 %v454_v40, %v453_v39 }
  0xfa   : > { %v456_v42 = vrot.slane %v455_v41, 2 }
  0xfc   : > { %v457_v43 = vadd.f32 %v456_v42, %v455_v41 }
  0xfe   : > { %v458_v44 = vrot.slane %v457_v43, 1 }
 0x100   : > { %v459_v45 = vadd.f32 %v458_v44, %v457_v43 }
 0x102   : > { %v460_v46 = vmul.f32 0.125, %v459_v45 }
 0x104   : > { %v462_v47 = vadd.f32 1e-05, %v460_v46 }
 0x106   : > { %1346 = vrsqrt.f32 %v462_v47  ;;  %vm469_vm2 = vweird.f32 %v462_v47 }
 0x10c   : > { %v1347_v48 = vpop.eup %1346 }
 0x10d   : > { %v464_v49 = vmul.f32 %v1347_v48, %v462_v47  ;;  %vm470_vm1 = vweird.f32 %v1347_v48 }
 0x10e   : > { %vm471_vm3 = vmor %vm469_vm2, %vm470_vm1 }
 0x10f   : > { %v465_v50 = vmul.f32 %v1347_v48, %v464_v49 }
 0x111   : > { %v466_v51 = vmul.f32 0.5, %v465_v50 }
 0x113   : > { %v467_v52 = vsub.f32 1.5, %v466_v51 }
 0x115   : > { %v468_v54 = vmul.f32 %v1347_v48, %v467_v52 }
 0x117   : > { %v472_v55 = vsel %vm471_vm3, %v1347_v48, %v468_v54 }
 0x118   : > { %v473_v56 = vmul.f32 %v472_v55, %v461_v53 }
 0x11a   : > { %v474_v57 = vperm.slane %v473_v56, 0  ;;  %v659_v56 = vld [vmem:[#allocation8 + $0x1] sm:$0x1] }
 0x11c   : > { %v475_v59 = vmul.f32 %v474_v57, %v451_v37 }
 0x11e   : > { %v478_v60 = vadd.f32 %v1342_v58, %v475_v59 }
 0x120   : > { %v479_v61 = vand.u32 2147483647, %v478_v60 }
 0x122   : > { %v480_v62 = vsel %vm292_vm0, %v479_v61, -inf  ;;  %v1343_v61 = vld [vmem:[#allocation8 + $0x5] ss:$0 sm:$0xff] }
 0x123   : > { %481 = vmax.xlane.f32.xlu0 %v480_v62 }
 0x196   : > { %v482_v11 = vpop.xlane.xlu0 %481 }
 0x197   : > { %v483_v12 = vmul.f32 3.0, %v482_v11  ;;  %v734_v11 = vand.u32 4294901760, %v733_v8 }
 0x199   : > { %v484_v13 = vmul.f32 %v483_v12, %v1739_v10  ;;  %v738_v12 = vsub.f32 %v736_v7, %v737_v9  ;;  %735 = vmatpush.msrb.mxu1 %v734_v11 }
 0x19b   : > { %v485_v14 = vsel %vm287_vm4, %v484_v13, %v478_v60  ;;  %v739_v13 = vand.u32 4294901760, %v738_v12 }
 0x19c   : > { %v492_v15 = vsel %vm292_vm0, %v485_v14, 0 }
 0x19d   : > { %v510_v16 = vand.u32 4294901760, %v492_v15  ;;  %740 = vmatpush.msrb.mxu1 %v739_v13 }
 0x19f   : > { %544 = vmatmul.f32.vlgmr.msrb.gmra.mxu3 %v510_v16  ;;  %v511_v17 = vsub.f32 %v492_v15, %v510_v16 }
 0x1a0   : > { %784 = vmatpush.msrb.mxu3 %v1263_v3 }
 0x1a1   : > { %568 = vmatmul.f32.vlgmr.msra.gmra.mxu0 %v511_v17  ;;  %v512_v18 = vand.u32 4294901760, %v511_v17 }
 0x1a2   : > { %785 = vmatpush.msrb.mxu3 %v1262_v5  ;;  %809 = vmatpush.msra.mxu0 %v732_v6 }
 0x1a3   : > { %591 = vmatmul.f32.vlgmr.msra.gmra.mxu1 %v512_v18  ;;  %v513_v19 = vsub.f32 %v511_v17, %v512_v18 }
 0x1a4   : > { %812 = vmatpush.msra.mxu0 %v737_v9  ;;  %832 = vmatpush.msra.mxu1 %v1263_v3 }
 0x1a5   : > { %v514_v20 = vand.u32 4294901760, %v513_v19 }
 0x1a6   : > { %833 = vmatpush.msra.mxu1 %v1262_v5  ;;  %v1265_v5 = vld [vmem:[#allocation7 + $0x18] sm:$0xff]  }
 0x1a7   : > { %515 = vmatmul.f32.vlgmr.msrb.gmra.mxu2 %v514_v20  ;;  %637 = vmatmul.f32.vlgmr.msra.gmra.mxu3 %v510_v16  ;;  %v1267_v6 = vunpack.c.h.bf16 %v1265_v5  ;;  %v1266_v8 = vunpack.c.l.bf16 %v1265_v5 }
 0x1a8   : > { %761 = vmatpush.msrb.mxu2 %v731_v4 }
 0x1a9   : > { %v934_v11 = vsub.f32 %v1266_v8, %v1266_v8 }
 0x1aa   : > { %763 = vmatpush.msrb.mxu2 %v736_v7  ;;  %v929_v7 = vsub.f32 %v1267_v6, %v1267_v6 }
 0x1ab   : > { %v935_v13 = vand.u32 4294901760, %v934_v11 }
 0x1ac   : > { %v930_v9 = vand.u32 4294901760, %v929_v7 }
 0x1ae   : > { %v931_v12 = vsub.f32 %v929_v7, %v930_v9 }
 0x1af   : > { %616 = vmatmul.f32.vlgmr.msra.gmra.mxu2 %v510_v16 }
 0x1b0   : > { %904 = vmatpush.msra.mxu2 %v1267_v6 }
 0x1b2   : > { %905 = vmatpush.msra.mxu2 %v1266_v8 }
 0x21e   : > { %v569_v24 = vpop.f32.mrf.mxu0 }
 0x220   : > { %v592_v26 = vpop.f32.mrf.mxu1 }
 0x222   : > { %v545_v21 = vpop.f32.mrf.mxu3 }
 0x22a   : > { %v516_v22 = vpop.f32.mrf.mxu2  ;;  %v638_v30 = vpop.f32.mrf.mxu3 }
 0x22b   : > { %v546_v23 = vadd.f32 %v545_v21, %v516_v22 }
 0x22d   : > { %v570_v25 = vadd.f32 %v569_v24, %v546_v23 }
 0x22f   : > { %v593_v27 = vadd.f32 %v592_v26, %v570_v25 }
 0x232   : > { %v617_v28 = vpop.f32.mrf.mxu2 }
 0x233   : > { %v618_v29 = vadd.f32 %v617_v28, %v593_v27 }
 0x235   : > { %v639_v31 = vadd.f32 %v638_v30, %v618_v29 }
 0x237   : > { %v641_v32 = vsel %vm292_vm0, %v639_v31, 0.0 }
 0x238   : > { %v642_v33 = vrot.slane %v641_v32, 4 }
 0x23a   : > { %v643_v34 = vadd.f32 %v642_v33, %v641_v32 }
 0x23c   : > { %v644_v35 = vrot.slane %v643_v34, 2 }
 0x23e   : > { %v645_v36 = vadd.f32 %v644_v35, %v643_v34 }
 0x240   : > { %v646_v37 = vrot.slane %v645_v36, 1 }
 0x242   : > { %v647_v38 = vadd.f32 %v646_v37, %v645_v36 }
 0x244   : > { %v648_v39 = vmul.f32 0.125, %v647_v38 }
 0x246   : > { %v649_v40 = vsub.f32 %v639_v31, %v648_v39 }
 0x248   : > { %v650_v41 = vmul.f32 %v649_v40, %v649_v40 }
 0x24a   : > { %v651_v42 = vsel %vm292_vm0, %v650_v41, 0.0 }
 0x24b   : > { %v652_v43 = vrot.slane %v651_v42, 4 }
 0x24d   : > { %v653_v44 = vadd.f32 %v652_v43, %v651_v42 }
 0x24f   : > { %v654_v45 = vrot.slane %v653_v44, 2 }
 0x251   : > { %v655_v46 = vadd.f32 %v654_v45, %v653_v44 }
 0x253   : > { %v656_v47 = vrot.slane %v655_v46, 1 }
 0x255   : > { %v657_v48 = vadd.f32 %v656_v47, %v655_v46 }
 0x257   : > { %v658_v49 = vmul.f32 0.125, %v657_v48 }
 0x259   : > { %v660_v50 = vadd.f32 1e-05, %v658_v49 }
 0x25b   : > { %1348 = vrsqrt.f32 %v660_v50  ;;  %vm667_vm6 = vweird.f32 %v660_v50 }
 0x261   : > { %v1349_v51 = vpop.eup %1348 }
 0x262   : > { %v662_v52 = vmul.f32 %v1349_v51, %v660_v50  ;;  %vm668_vm5 = vweird.f32 %v1349_v51 }
 0x263   : > { %vm669_vm7 = vmor %vm667_vm6, %vm668_vm5 }
 0x264   : > { %v663_v53 = vmul.f32 %v1349_v51, %v662_v52 }
 0x266   : > { %v664_v54 = vmul.f32 0.5, %v663_v53 }
 0x268   : > { %v665_v55 = vsub.f32 1.5, %v664_v54 }
 0x26a   : > { %v666_v57 = vmul.f32 %v1349_v51, %v665_v55 }
 0x26c   : > { %v670_v58 = vsel %vm669_vm7, %v1349_v51, %v666_v57 }
 0x26d   : > { %v671_v59 = vmul.f32 %v670_v58, %v659_v56 }
 0x26f   : > { %v672_v60 = vperm.slane %v671_v59, 0  ;;  %v857_v59 = vld [vmem:[#allocation8 + $0x2] sm:$0x1] }
 0x271   : > { %v673_v62 = vmul.f32 %v672_v60, %v649_v40 }
 0x273   : > { %v676_v63 = vadd.f32 %v1343_v61, %v673_v62 }
 0x275   : > { %v677_v0 = vand.u32 2147483647, %v676_v63 }
 0x277   : > { %v678_v1 = vsel %vm292_vm0, %v677_v0, -inf  ;;  %v1344_v0 = vld [vmem:[#allocation8 + $0x6] ss:$0 sm:$0xff] }
 0x278   : > { %679 = vmax.xlane.f32.xlu0 %v678_v1 }
 0x2eb   : > { %v680_v14 = vpop.xlane.xlu0 %679 }
 0x2ec   : > { %v681_v15 = vmul.f32 3.0, %v680_v14  ;;  %v932_v14 = vand.u32 4294901760, %v931_v12 }
 0x2ee   : > { %v682_v16 = vmul.f32 %v681_v15, %v1739_v10  ;;  %v936_v15 = vsub.f32 %v934_v11, %v935_v13  ;;  %933 = vmatpush.msra.mxu3 %v932_v14 }
 0x2f0   : > { %v683_v17 = vsel %vm287_vm4, %v682_v16, %v676_v63  ;;  %v937_v16 = vand.u32 4294901760, %v936_v15 }
 0x2f1   : > { %v690_v18 = vsel %vm292_vm0, %v683_v17, 0 }
 0x2f2   : > { %v708_v19 = vand.u32 4294901760, %v690_v18  ;;  %938 = vmatpush.msra.mxu3 %v937_v16 }
 0x2f4   : > { %742 = vmatmul.f32.vlgmr.msrb.gmra.mxu1 %v708_v19  ;;  %v709_v20 = vsub.f32 %v690_v18, %v708_v19 }
 0x2f5   : > { %982 = vmatpush.msrb.mxu1 %v1267_v6 }
 0x2f6   : > { %766 = vmatmul.f32.vlgmr.msrb.gmra.mxu2 %v709_v20  ;;  %v710_v21 = vand.u32 4294901760, %v709_v20 }
 0x2f7   : > { %983 = vmatpush.msrb.mxu1 %v1266_v8  ;;  %1007 = vmatpush.msrb.mxu2 %v930_v9 }
 0x2f8   : > { %789 = vmatmul.f32.vlgmr.msrb.gmra.mxu3 %v710_v21  ;;  %v711_v22 = vsub.f32 %v709_v20, %v710_v21 }
 0x2f9   : > { %1010 = vmatpush.msrb.mxu2 %v935_v13  ;;  %1030 = vmatpush.msrb.mxu3 %v1267_v6 }
 0x2fa   : > { %v712_v23 = vand.u32 4294901760, %v711_v22 }
 0x2fb   : > { %1031 = vmatpush.msrb.mxu3 %v1266_v8 }
 0x2fc   : > { %713 = vmatmul.f32.vlgmr.msrb.gmra.mxu0 %v712_v23  ;;  %835 = vmatmul.f32.vlgmr.msra.gmra.mxu1 %v708_v19 }
 0x2fd   : > { %959 = vmatpush.msrb.mxu0 %v929_v7 }
 0x2ff   : > { %961 = vmatpush.msrb.mxu0 %v934_v11 }
 0x304   : > { %814 = vmatmul.f32.vlgmr.msra.gmra.mxu0 %v708_v19 }
 0x371   : > { %v743_v24 = vpop.f32.mrf.mxu1 }
 0x379   : > { %v714_v25 = vpop.f32.mrf.mxu0  ;;  %v767_v27 = vpop.f32.mrf.mxu2 }
 0x37a   : > { %v744_v26 = vadd.f32 %v743_v24, %v714_v25  ;;  %v836_v33 = vpop.f32.mrf.mxu1 }
 0x37b   : > { %v790_v29 = vpop.f32.mrf.mxu3 }
 0x37c   : > { %v768_v28 = vadd.f32 %v767_v27, %v744_v26 }
 0x37e   : > { %v791_v30 = vadd.f32 %v790_v29, %v768_v28 }
 0x381   : > { %v815_v31 = vpop.f32.mrf.mxu0 }
 0x382   : > { %v816_v32 = vadd.f32 %v815_v31, %v791_v30 }
 0x384   : > { %v837_v34 = vadd.f32 %v836_v33, %v816_v32 }
 0x386   : > { %v839_v35 = vsel %vm292_vm0, %v837_v34, 0.0 }
 0x387   : > { %v840_v36 = vrot.slane %v839_v35, 4 }
 0x389   : > { %v841_v37 = vadd.f32 %v840_v36, %v839_v35 }
 0x38b   : > { %v842_v38 = vrot.slane %v841_v37, 2 }
 0x38d   : > { %v843_v39 = vadd.f32 %v842_v38, %v841_v37 }
 0x38f   : > { %v844_v40 = vrot.slane %v843_v39, 1 }
 0x391   : > { %v845_v41 = vadd.f32 %v844_v40, %v843_v39 }
 0x393   : > { %v846_v42 = vmul.f32 0.125, %v845_v41 }
 0x395   : > { %v847_v43 = vsub.f32 %v837_v34, %v846_v42 }
 0x397   : > { %v848_v44 = vmul.f32 %v847_v43, %v847_v43 }
 0x399   : > { %v849_v45 = vsel %vm292_vm0, %v848_v44, 0.0 }
 0x39a   : > { %v850_v46 = vrot.slane %v849_v45, 4 }
 0x39c   : > { %v851_v47 = vadd.f32 %v850_v46, %v849_v45 }
 0x39e   : > { %v852_v48 = vrot.slane %v851_v47, 2 }
 0x3a0   : > { %v853_v49 = vadd.f32 %v852_v48, %v851_v47 }
 0x3a2   : > { %v854_v50 = vrot.slane %v853_v49, 1 }
 0x3a4   : > { %v855_v51 = vadd.f32 %v854_v50, %v853_v49 }
 0x3a6   : > { %v856_v52 = vmul.f32 0.125, %v855_v51 }
 0x3a8   : > { %v858_v53 = vadd.f32 1e-05, %v856_v52 }
 0x3aa   : > { %1350 = vrsqrt.f32 %v858_v53  ;;  %vm865_vm9 = vweird.f32 %v858_v53 }
 0x3b0   : > { %v1351_v54 = vpop.eup %1350 }
 0x3b1   : > { %v860_v55 = vmul.f32 %v1351_v54, %v858_v53  ;;  %vm866_vm8 = vweird.f32 %v1351_v54 }
 0x3b2   : > { %vm867_vm10 = vmor %vm865_vm9, %vm866_vm8 }
 0x3b3   : > { %v861_v56 = vmul.f32 %v1351_v54, %v860_v55 }
 0x3b5   : > { %v862_v57 = vmul.f32 0.5, %v861_v56 }
 0x3b7   : > { %v863_v58 = vsub.f32 1.5, %v862_v57 }
 0x3b9   : > { %v864_v60 = vmul.f32 %v1351_v54, %v863_v58 }
 0x3bb   : > { %v868_v61 = vsel %vm867_vm10, %v1351_v54, %v864_v60 }
 0x3bc   : > { %v869_v62 = vmul.f32 %v868_v61, %v857_v59 }
 0x3be   : > { %v870_v63 = vperm.slane %v869_v62, 0  ;;  %v1055_v62 = vld [vmem:[#allocation8 + $0x3] sm:$0x1] }
 0x3c0   : > { %v871_v1 = vmul.f32 %v870_v63, %v847_v43 }
 0x3c2   : > { %v874_v2 = vadd.f32 %v1344_v0, %v871_v1 }
 0x3c4   : > { %v875_v3 = vand.u32 2147483647, %v874_v2 }
 0x3c6   : > { %v876_v4 = vsel %vm292_vm0, %v875_v3, -inf  ;;  %v1345_v3 = vld [vmem:[#allocation8 + $0x7] ss:$0 sm:$0xff] }
 0x3c7   : > { %877 = vmax.xlane.f32.xlu1 %v876_v4 }
 0x43a   : > { %v878_v17 = vpop.xlane.xlu1 %877 }
 0x43b   : > { %v879_v18 = vmul.f32 4.0, %v878_v17 }
 0x43d   : > { %v880_v19 = vmul.f32 %v879_v18, %v1739_v10 }
 0x43f   : > { %v881_v20 = vsel %vm287_vm4, %v880_v19, %v874_v2 }
 0x440   : > { %v888_v21 = vsel %vm292_vm0, %v881_v20, 0 }
 0x441   : > { %v906_v22 = vand.u32 4294901760, %v888_v21 }
 0x443   : > { %940 = vmatmul.f32.vlgmr.msra.gmra.mxu3 %v906_v22  ;;  %v907_v23 = vsub.f32 %v888_v21, %v906_v22 }
 0x445   : > { %964 = vmatmul.f32.vlgmr.msrb.gmra.mxu0 %v907_v23  ;;  %v908_v24 = vand.u32 4294901760, %v907_v23 }
 0x447   : > { %987 = vmatmul.f32.vlgmr.msrb.gmra.mxu1 %v908_v24  ;;  %v909_v25 = vsub.f32 %v907_v23, %v908_v24 }
 0x449   : > { %v910_v26 = vand.u32 4294901760, %v909_v25 }
 0x44b   : > { %911 = vmatmul.f32.vlgmr.msra.gmra.mxu2 %v910_v26  ;;  %1033 = vmatmul.f32.vlgmr.msrb.gmra.mxu3 %v906_v22 }
 0x453   : > { %1012 = vmatmul.f32.vlgmr.msrb.gmra.mxu2 %v906_v22 }
 0x4c2   : > { %v965_v30 = vpop.f32.mrf.mxu0 }
 0x4c4   : > { %v988_v32 = vpop.f32.mrf.mxu1 }
 0x4c6   : > { %v941_v27 = vpop.f32.mrf.mxu3 }
 0x4ce   : > { %v912_v28 = vpop.f32.mrf.mxu2  ;;  %v1034_v36 = vpop.f32.mrf.mxu3 }
 0x4cf   : > { %v942_v29 = vadd.f32 %v941_v27, %v912_v28 }
 0x4d1   : > { %v966_v31 = vadd.f32 %v965_v30, %v942_v29 }
 0x4d3   : > { %v989_v33 = vadd.f32 %v988_v32, %v966_v31 }
 0x4d6   : > { %v1013_v34 = vpop.f32.mrf.mxu2 }
 0x4d7   : > { %v1014_v35 = vadd.f32 %v1013_v34, %v989_v33 }
 0x4d9   : > { %v1035_v37 = vadd.f32 %v1034_v36, %v1014_v35 }
 0x4db   : > { %v1037_v38 = vsel %vm292_vm0, %v1035_v37, 0.0 }
 0x4dc   : > { %v1038_v39 = vrot.slane %v1037_v38, 4 }
 0x4de   : > { %v1039_v40 = vadd.f32 %v1038_v39, %v1037_v38 }
 0x4e0   : > { %v1040_v41 = vrot.slane %v1039_v40, 2 }
 0x4e2   : > { %v1041_v42 = vadd.f32 %v1040_v41, %v1039_v40 }
 0x4e4   : > { %v1042_v43 = vrot.slane %v1041_v42, 1 }
 0x4e6   : > { %v1043_v44 = vadd.f32 %v1042_v43, %v1041_v42 }
 0x4e8   : > { %v1044_v45 = vmul.f32 0.125, %v1043_v44 }
 0x4ea   : > { %v1045_v46 = vsub.f32 %v1035_v37, %v1044_v45 }
 0x4ec   : > { %v1046_v47 = vmul.f32 %v1045_v46, %v1045_v46 }
 0x4ee   : > { %v1047_v48 = vsel %vm292_vm0, %v1046_v47, 0.0 }
 0x4ef   : > { %v1048_v49 = vrot.slane %v1047_v48, 4 }
 0x4f1   : > { %v1049_v50 = vadd.f32 %v1048_v49, %v1047_v48 }
 0x4f3   : > { %v1050_v51 = vrot.slane %v1049_v50, 2 }
 0x4f5   : > { %v1051_v52 = vadd.f32 %v1050_v51, %v1049_v50 }
 0x4f7   : > { %v1052_v53 = vrot.slane %v1051_v52, 1 }
 0x4f9   : > { %v1053_v54 = vadd.f32 %v1052_v53, %v1051_v52 }
 0x4fb   : > { %v1054_v55 = vmul.f32 0.125, %v1053_v54 }
 0x4fd   : > { %v1056_v56 = vadd.f32 1e-05, %v1054_v55 }
 0x4ff   : > { %1352 = vrsqrt.f32 %v1056_v56  ;;  %vm1063_vm12 = vweird.f32 %v1056_v56 }
 0x505   : > { %v1353_v57 = vpop.eup %1352 }
 0x506   : > { %v1058_v58 = vmul.f32 %v1353_v57, %v1056_v56  ;;  %vm1064_vm11 = vweird.f32 %v1353_v57 }
 0x507   : > { %vm1065_vm13 = vmor %vm1063_vm12, %vm1064_vm11 }
 0x508   : > { %v1059_v59 = vmul.f32 %v1353_v57, %v1058_v58 }
 0x50a   : > { %v1060_v60 = vmul.f32 0.5, %v1059_v59 }
 0x50c   : > { %v1061_v61 = vsub.f32 1.5, %v1060_v60 }
 0x50e   : > { %v1062_v63 = vmul.f32 %v1353_v57, %v1061_v61 }
 0x510   : > { %v1066_v0 = vsel %vm1065_vm13, %v1353_v57, %v1062_v63 }
 0x511   : > { %v1067_v1 = vmul.f32 %v1066_v0, %v1055_v62 }
 0x513   : > { %v1068_v2 = vperm.slane %v1067_v1, 0 }
 0x515   : > { %v1069_v4 = vmul.f32 %v1068_v2, %v1045_v46 }
 0x517   : > { %v1072_v5 = vadd.f32 %v1345_v3, %v1069_v4 }
 0x519   : > { %v1073_v6 = vand.u32 2147483647, %v1072_v5 }
 0x51b   : > { %v1074_v7 = vsel %vm292_vm0, %v1073_v6, -inf }
 0x51c   : > { %1075 = vmax.xlane.f32.xlu1 %v1074_v7 }
 0x58f   : > { %v1076_v8 = vpop.xlane.xlu1 %1075 }
 0x590   : > { %v1077_v9 = vmul.f32 4.0, %v1076_v8 }
 0x592   : > { %v1078_v11 = vmul.f32 %v1077_v9, %v1739_v10 }
 0x594   : > { %v1079_v12 = vsel %vm287_vm4, %v1078_v11, %v1072_v5 }
 0x595   : > { %v1080_v13 = vsel %vm292_vm0, %v1079_v12, -inf }
 0x596   : > { %1081 = vmax.xlane.f32.xlu2 %v1080_v13 }
 0x609   : > { %v1082_v14 = vpop.xlane.xlu2 %1081 }
 0x60a   : > { %v1083_v15 = vsub.f32 %v1079_v12, %v1082_v14 }
 0x60c   : > { %v1084_v16 = vmul.f32 1.442695, %v1083_v15 }
 0x60e   : > { %1354 = vpow2.f32 %v1084_v16 }
 0x614   : > { %v1355_v17 = vpop.eup %1354 }
 0x615   : > { %v1086_v18 = vsel %vm292_vm0, %v1355_v17, 0.0 }
 0x616   : > { %1087 = vadd.xlane.f32.xlu2 %v1086_v18 }
 0x689   : > { %v1088_v19 = vpop.xlane.xlu2 %1087 }
 0x68a   : > { %1356 = vrcp.f32 %v1088_v19  ;;  %v1100_v10 = vand.u32 2147483648, %v1088_v19  ;;  %v1098_v24 = vand.u32 2147483647, %v1088_v19  ;;  %vm1094_vm15 = vweird.f32 %v1088_v19 }
 0x68c   : > { %v1101_v26 = vor.u32 1.1754944e-38, %v1100_v10  ;;  %vm1099_vm2 = vcmp.eq.f32.partialorder %v1098_v24, 8.507059e+37 }
 0x690   : > { %v1357_v20 = vpop.eup %1356 }
 0x691   : > { %v1090_v21 = vmul.f32 %v1357_v20, %v1088_v19  ;;  %vm1095_vm14 = vweird.f32 %v1357_v20 }
 0x692   : > { %vm1096_vm1 = vmor %vm1094_vm15, %vm1095_vm14 }
 0x693   : > { %v1091_v22 = vsub.f32 1.0, %v1090_v21 }
 0x695   : > { %v1092_v23 = vmul.f32 %v1357_v20, %v1091_v22 }
 0x697   : > { %v1093_v25 = vadd.f32 %v1357_v20, %v1092_v23 }
 0x699   : > { %v1097_v27 = vsel %vm1096_vm1, %v1357_v20, %v1093_v25 }
 0x69a   : > { %v1102_v28 = vsel %vm1099_vm2, %v1101_v26, %v1097_v27 }
 0x69b   : > { %v1103_v29 = vmul.f32 %v1355_v17, %v1102_v28 }
 0x69d   : > { %1104 = vst.msk [vmem:[%s284_s14] sm:$0xff] %vm292_vm0, %v1103_v29 }
 0x69e   : > { %1505 = shalt.err (!%p1502_p8)
}
 0x69f   : > { %1280 = dma.vmem_to_hbm [thread:$0]  (%p1655_p2), %s1119_s24, 128, %s1121_s12, %s1106_s22  }
 0x6a0 PF: > { %p1305_p9 = scmp.ge.s32.totalorder %s1556_s18, 2  ;;  %s1132_s21 = sand.u32 1, %s1544_s15  }
 0x6a1   : > { %s1133_s30 = scalar_lea.sflag [#allocation4], %s1132_s21 }
 0x6a2   : > { %p1297_p10 = pnand %p1305_p9, %p1659_p4 }
 0x6a4   : > { %p1298_p12 = pneg %p1297_p10 }
 0x6a6   : > { %1539 = dma.done.wait (%p1298_p12), %s1133_s30, 128  }
 0x6a7   : > { %1541 = vsyncadd (%p1298_p12), %s1133_s30, 4294967168  ;;  %s1818_s11 = sld [smem:[#allocation16_spill]]  ;;  %p21_p13 = scmp.ge.s32.totalorder %s1629_s8, 6  }
 0x6a8   : > { %s1819_s15 = smov %s1548_s16  ;;  %s1820_s16 = smov %s1552_s17 }
 0x6a9   : > { %s1822_s18 = smov %s1629_s8  ;;  %23 = sbr.rel (!%p21_p13) target bundleno = 11 (0xb), region = 105 }
 0x6ad   : > { %s1821_s17 = smov %s1818_s11 }
 0x6ae   :  { %1139 = vsyncpa [#allocation3], 1 }
 0x6af   :  { %1141 = vsyncpa [#allocation3 + $0x1], 1 }
 0x6b0   :  { %1142 = vsyncpa [#allocation6], 1 }
 0x6b1   :  { %1144 = vsyncpa [#allocation6 + $0x1], 1 }
 0x6b2   :  { %1145 = vsyncpa [#allocation9], 1 }
 0x6b3   :  { %1146 = vsyncpa [#allocation4], 1 }
 0x6b4   :  { %1148 = vsyncpa [#allocation4 + $0x1], 1 }

</bundles_post_ra>
